<compile_context>
chip_gen: v7x
topology: tpu7x:2x2x1
jax: 0.10.0
libtpu: 0.0.40
codegen_flags: <defaults>
</compile_context>

<pallas_src>
import jax
import jax.numpy as jnp
from jax.experimental import pallas as pl
from jax.experimental.pallas import tpu as pltpu


def attn_merge_kernel(x_ref, w_ref, o_ref):
    # x_ref: (Bt, S, H) block of batch rows
    # w_ref: (H, H) full Linear weight (out_features, in_features), resident
    # o_ref: (Bt, H) output block
    bt, s, h = x_ref.shape
    x = x_ref[...]                                   # native dtype, (Bt, S, H)
    w = w_ref[...]                                   # native dtype, (H, H)

    # hx = x @ W.T without transposing W: contract the last dim of both
    # operands on the MXU, accumulate in f32.
    x2 = x.reshape(bt * s, h)                        # (Bt*S, H)
    hx = jax.lax.dot_general(
        x2, w,
        dimension_numbers=(((1,), (1,)), ((), ())),
        preferred_element_type=jnp.float32,
    ).reshape(bt, s, h)                              # (Bt, S, H) f32

    # Softmax over the sequence axis (dim=1), normalization deferred.
    m = jnp.max(hx, axis=1, keepdims=True)           # (Bt, 1, H)
    e = jnp.exp(hx - m)                              # (Bt, S, H) f32
    denom = jnp.sum(e, axis=1)                       # (Bt, H)
    num = jnp.sum(e * x.astype(jnp.float32), axis=1) # (Bt, H)  unnormalized

    out = num * pl.reciprocal(denom, approx=True)    # EUP reciprocal (free slot)
    o_ref[...] = out.astype(o_ref.dtype)


def _pick_bt(batch):
    # Batch-tile: full batch if small (block == full extent satisfies the
    # (8,128) rule), otherwise a multiple of 8 so the output block is
    # sublane-aligned and the store path is unmasked.
    if batch <= 8:
        return batch
    for bt in (32, 16, 8):
        if bt <= batch:
            return bt
    return 8


def attn_merge(x, w, *, bt=None):
    """x: (B, S, H); w: (H, H) nn.Linear weight (out, in). Returns (B, H)."""
    B, S, H = x.shape
    assert w.shape == (H, H)
    if bt is None:
        bt = _pick_bt(B)
    grid = (pl.cdiv(B, bt),)

    # VMEM budget estimate: double-buffered x blocks + resident W + output
    # blocks + f32 intermediates, with 2x headroom; clamp so the same value is
    # valid on v7x's smaller (64 MiB physical / 32 MiB scoped) VMEM.
    xb = x.dtype.itemsize
    wb = w.dtype.itemsize
    est = (2 * bt * S * H * xb          # x blocks (double-buffered)
           + 2 * H * H * wb             # W
           + 2 * bt * H * xb            # output blocks
           + 6 * bt * S * H * 4)        # f32 intermediates (hx, e, temps)
    vmem_limit = int(min(max(2 * est, 4 * 1024 * 1024), 32 * 1024 * 1024))

    return pl.pallas_call(
        attn_merge_kernel,
        out_shape=jax.ShapeDtypeStruct((B, H), x.dtype),
        grid_spec=pltpu.PrefetchScalarGridSpec(
            num_scalar_prefetch=0,
            grid=grid,
            in_specs=[
                pl.BlockSpec((bt, S, H), lambda i: (i, 0, 0)),
                pl.BlockSpec((H, H), lambda i: (0, 0)),   # W resident across steps
            ],
            out_specs=pl.BlockSpec((bt, H), lambda i: (i, 0)),
        ),
        compiler_params=pltpu.CompilerParams(
            dimension_semantics=("parallel",),   # batch-tile grid; shards across v7x TCs
            vmem_limit_bytes=vmem_limit,
        ),
    )(x, w)


def attn_merge_ref(x, w):
    # Pure-JAX reference replicating the PyTorch forward.
    hx = jnp.einsum("bsh,oh->bso", x, w)
    alpha = jax.nn.softmax(hx, axis=1)
    return jnp.sum(alpha * x, axis=1)


if __name__ == "__main__":
    key = jax.random.PRNGKey(0)
    k_x, k_w = jax.random.split(key)

    B, S, H = 2, 8, 32
    x = jax.random.normal(k_x, (B, S, H), dtype=jnp.float32)
    # deterministic Linear weight init (Kaiming-uniform-like bound 1/sqrt(H))
    bound = 1.0 / (H ** 0.5)
    w = jax.random.uniform(k_w, (H, H), dtype=jnp.float32,
                           minval=-bound, maxval=bound)

    out = attn_merge(x, w)
    jax.block_until_ready(out)

    ref = attn_merge_ref(x, w)
    assert out.shape == (B, H)
    # approx=True reciprocal in the softmax denominator -> ~1e-3 rel deviation
    assert jnp.allclose(out, ref, atol=5e-3, rtol=5e-3), \
        f"max abs err = {jnp.max(jnp.abs(out - ref))}"

    print("KERNEL_OK")
</pallas_src>

<mosaic_0001>
module attributes {stable_mosaic.version = 11 : i64} {
  func.func @attn_merge_kernel(%arg0: i32, %arg1: memref<2x8x32xf32, #tpu.memory_space<vmem>>, %arg2: memref<32x32xf32, #tpu.memory_space<vmem>>, %arg3: memref<2x32xf32, #tpu.memory_space<vmem>>) attributes {dimension_semantics = [#tpu.dimension_semantics<parallel>], iteration_bounds = array<i64: 1>, scalar_prefetch = 0 : i64, scratch_operands = 0 : i64, tpu.core_type = #tpu.core_type<tc>, window_params = [{transform_indices = @transform_0, window_bounds = array<i64: 2, 8, 32>}, {pipeline_mode = #tpu.pipeline_mode<synchronous>, transform_indices = @transform_1, window_bounds = array<i64: 32, 32>}, {transform_indices = @transform_2, window_bounds = array<i64: 2, 32>}]} {
    %c0 = arith.constant 0 : index
    %c0_0 = arith.constant 0 : index
    %c0_1 = arith.constant 0 : index
    %0 = vector.load %arg1[%c0, %c0_0, %c0_1] : memref<2x8x32xf32, #tpu.memory_space<vmem>>, vector<2x8x32xf32>
    %c0_2 = arith.constant 0 : index
    %c0_3 = arith.constant 0 : index
    %1 = vector.load %arg2[%c0_2, %c0_3] : memref<32x32xf32, #tpu.memory_space<vmem>>, vector<32x32xf32>
    %2 = vector.shape_cast %0 : vector<2x8x32xf32> to vector<16x32xf32>
    %cst = arith.constant dense<0.000000e+00> : vector<16x32xf32>
    %3 = tpu.matmul %2, %1, %cst {dimension_numbers = #tpu.dot_dimension_numbers<[1], [1], [0], [0], [0, 0, 1, 0], [], []>} : vector<16x32xf32>, vector<32x32xf32>, vector<16x32xf32> -> vector<16x32xf32>
    %4 = vector.shape_cast %3 : vector<16x32xf32> to vector<2x8x32xf32>
    %cst_4 = arith.constant dense<0xFF800000> : vector<2x32xf32>
    %5 = vector.multi_reduction <maximumf>, %4, %cst_4 [1] : vector<2x8x32xf32> to vector<2x32xf32>
    %6 = vector.shape_cast %5 : vector<2x32xf32> to vector<2x1x32xf32>
    %7 = vector.broadcast %6 : vector<2x1x32xf32> to vector<2x8x32xf32>
    %8 = arith.subf %4, %7 : vector<2x8x32xf32>
    %9 = math.exp %8 : vector<2x8x32xf32>
    %cst_5 = arith.constant dense<0.000000e+00> : vector<2x32xf32>
    %10 = vector.multi_reduction <add>, %9, %cst_5 [1] : vector<2x8x32xf32> to vector<2x32xf32>
    %11 = arith.mulf %9, %0 : vector<2x8x32xf32>
    %cst_6 = arith.constant dense<0.000000e+00> : vector<2x32xf32>
    %12 = vector.multi_reduction <add>, %11, %cst_6 [1] : vector<2x8x32xf32> to vector<2x32xf32>
    %13 = tpu.reciprocal %10 {approx = true} : vector<2x32xf32> -> vector<2x32xf32>
    %14 = arith.mulf %12, %13 : vector<2x32xf32>
    %c0_7 = arith.constant 0 : index
    %c0_8 = arith.constant 0 : index
    %15 = vector.load %arg3[%c0_7, %c0_8] : memref<2x32xf32, #tpu.memory_space<vmem>>, vector<2x32xf32>
    tpu.vector_store %arg3[%c0_7, %c0_8], %14 {strides = array<i32>} : memref<2x32xf32, #tpu.memory_space<vmem>>, vector<2x32xf32>,
    return
  }
  func.func @transform_0(%arg0: i32) -> (i32, i32, i32) {
    %c0_i32 = arith.constant 0 : i32
    %c0_i32_0 = arith.constant 0 : i32
    %c0_i32_1 = arith.constant 0 : i32
    return %arg0, %c0_i32, %c0_i32_0 : i32, i32, i32
  }
  func.func @transform_1(%arg0: i32) -> (i32, i32) {
    %c0_i32 = arith.constant 0 : i32
    %c0_i32_0 = arith.constant 0 : i32
    %c0_i32_1 = arith.constant 0 : i32
    return %c0_i32, %c0_i32_0 : i32, i32
  }
  func.func @transform_2(%arg0: i32) -> (i32, i32) {
    %c0_i32 = arith.constant 0 : i32
    %c0_i32_0 = arith.constant 0 : i32
    return %arg0, %c0_i32 : i32, i32
  }
}

</mosaic_0001>

<bundles_post_ra>
// kernel: tpu_custom_call.1
= control target key start
LH: loop header
LB: loop body
LE: loop exit
PB: predicated region body
PF: predicated region fallthrough
CT: control target
= control target key end

     0   :  { %7 = vsyncpa [#allocation3], 0  ;;  %s403_s0 = inlined_call_operand.hbm [shape: f32[2,8,32], index: 0, kind: input, shape index: {}]   ;;  %s404_s1 = inlined_call_operand.hbm [shape: f32[32,32], index: 1, kind: input, shape index: {}]   ;;  %s405_s2 = inlined_call_operand.hbm [shape: f32[2,32], index: 2, kind: output, shape index: {}]  }
   0x1   :  { %8 = vsyncpa [#allocation6], 0 }
   0x2   :  { %9 = vsyncpa [#allocation4], 0  ;;  %s337_s9 = smov [#allocation2]   ;;  %s265_s13 = scalar_lea.hbm %s403_s0, 256 }
   0x3   :  { %s15_s10 = sshll.u32 %s337_s9, 4  ;;  %p266_p0 = scmp.ne.s32.totalorder %s403_s0, %s265_s13  ;;  %s16_s10 = int_to_ptr.vmem [resolvable:$true] %s15_s10 }
   0x4   :  { %p269_p1 = scmp.lt.u32.totalorder %s265_s13, %s403_s0 }
   0x6   :  { %p271_p2 = pnand %p269_p1, %p266_p0 }
   0x8   :  { %274 = shalt.err (!%p271_p2)
}
   0x9   :  { %s275_s18 = scalar_lea.vmem %s16_s10, 256  ;;  %p280_p4 = scmp.lt.s32.totalorder %s16_s10, %s16_s10 }
   0xa   :  { %p276_p3 = scmp.ne.s32.totalorder %s16_s10, %s275_s18  ;;  %p281_p5 = scmp.lt.s32.totalorder %s275_s18, %s275_s18 }
   0xc   :  { %p282_p6 = por %p281_p5, %p280_p4 }
   0xe   :  { %p283_p7 = pnand %p282_p6, %p276_p3 }
  0x10   :  { %286 = shalt.err (!%p283_p7)
}
  0x11   :  { %s338_s19 = smov 128   ;;  %s339_s20 = smov 8  }
  0x12   :  { %21 = dma.hbm_to_vmem [thread:$0]  %s403_s0, 256, %s16_s10, [#allocation3], %s338_s19, %s338_s19, %s339_s20  }
  0x13   :  { %s340_s23 = smov [#allocation5]   ;;  %s287_s27 = scalar_lea.hbm %s404_s1, 512 }
  0x14   :  { %s27_s24 = sshll.u32 %s340_s23, 4  ;;  %p288_p8 = scmp.ne.s32.totalorder %s404_s1, %s287_s27  ;;  %s28_s24 = int_to_ptr.vmem [resolvable:$true] %s27_s24 }
  0x15   :  { %p291_p9 = scmp.lt.u32.totalorder %s287_s27, %s404_s1 }
  0x17   :  { %p293_p10 = pnand %p291_p9, %p288_p8 }
  0x19   :  { %296 = shalt.err (!%p293_p10)
}
  0x1a   :  { %s297_s4 = scalar_lea.vmem %s28_s24, 512  ;;  %p302_p12 = scmp.lt.s32.totalorder %s28_s24, %s28_s24 }
  0x1b   :  { %p298_p11 = scmp.ne.s32.totalorder %s28_s24, %s297_s4  ;;  %p303_p13 = scmp.lt.s32.totalorder %s297_s4, %s297_s4 }
  0x1d   :  { %p304_p0 = por %p303_p13, %p302_p12 }
  0x1f   :  { %p305_p1 = pnand %p304_p0, %p298_p11 }
  0x21   :  { %308 = shalt.err (!%p305_p1)
}
  0x22   :  { %33 = dma.hbm_to_vmem [thread:$0]  %s404_s1, 512, %s28_s24, [#allocation6], %s338_s19, %s338_s19, %s339_s20  }
  0x23   :  { %331 = dma.done.wait [#allocation3], 256  }
  0x24   :  { %332 = vsyncadd [#allocation3], 4294967040 }
  0x25   :  { %333 = dma.done.wait [#allocation6], 512  }
  0x26   :  { %334 = vsyncadd [#allocation6], 4294966784  ;;  %vm46_vm0 = vcmask 261120   ;;  %v42_v0 = vld [vmem:[#allocation5] sm:$0xff]  ;;  %v43_v1 = vld [vmem:[#allocation5 + $0x8] sm:$0xff]  ;;  %s341_s1 = smov [#allocation7]  }
  0x27   :  { %vm241_vm1 = vmpackc.low %vm46_vm0, %vm46_vm0  ;;  %v44_v2 = vld [vmem:[#allocation5 + $0x10] sm:$0xff]  ;;  %v240_v3 = vpack.c.bf16 %v43_v1, %v42_v0  ;;  %v45_v4 = vld [vmem:[#allocation5 + $0x18] sm:$0xff]  ;;  %s207_s6 = sshll.u32 %s341_s1, 4  ;;  %vm196_vm2 = vcmask 1041409   ;;  %vm199_vm3 = vcmask 254976   ;;  %s208_s6 = int_to_ptr.vmem [resolvable:$true] %s207_s6 }
  0x28   :  { %v40_v5 = vld [vmem:[#allocation2] sm:$0xff]  ;;  %v246_v6 = vpack.c.bf16 %v45_v4, %v44_v2  ;;  %v41_v7 = vld [vmem:[#allocation2 + $0x8] sm:$0xff]  ;;  %s309_s7 = scalar_lea.vmem %s208_s6, 32  ;;  %p314_p3 = scmp.lt.s32.totalorder %s208_s6, %s208_s6 }
  0x29   :  { %237 = vmatprep.mubr.msk.f32.mxu0 %vm46_vm0, %v40_v5  ;;  %242 = vmatprep.subr.msk.bf16.mxu0 %vm241_vm1, %v240_v3  ;;  %p310_p2 = scmp.ne.s32.totalorder %s208_s6, %s309_s7  ;;  %p315_p4 = scmp.lt.s32.totalorder %s309_s7, %s309_s7 }
  0x2a   :  { %245 = vmatpush3.bf16.xpose.msk.msra.mxu0 %vm241_vm1, %v240_v3 }
  0x2b   :  { %248 = vmatprep.subr.msk.bf16.mxu0 %vm241_vm1, %v246_v6  ;;  %p316_p5 = por %p315_p4, %p314_p3 }
  0x2d   :  { %p317_p6 = pnand %p316_p5, %p310_p2 }
  0x32   :  { %251 = vmatpush3.bf16.xpose.msk.msra.mxu0 %vm241_vm1, %v246_v6 }
  0x39   :  { %238 = vmatmul.mubr.msk.f32.vlgmr.msra.gmra.mrb[0].mxu0 %vm46_vm0, %v41_v7 }
 0x10c   :  { %v239_v8 = vpop.f32.mrb[0].mxu0 }
 0x10d   :  { %v147_v9 = vsel %vm46_vm0, %v239_v8, -inf  ;;  %v131_v10 = vpop.f32.mrb[1].mxu0 }
 0x10e   :  { %v148_v11 = vrot.slane %v147_v9, 4  ;;  %v140_v12 = vsel %vm46_vm0, %v131_v10, -inf }
 0x10f   :  { %v141_v13 = vrot.slane %v140_v12, 4 }
 0x110   :  { %v149_v14 = vmax.f32 %v147_v9, %v148_v11 }
 0x111   :  { %v142_v15 = vmax.f32 %v140_v12, %v141_v13 }
 0x112   :  { %v150_v16 = vrot.slane %v149_v14, 2 }
 0x113   :  { %v143_v17 = vrot.slane %v142_v15, 2 }
 0x114   :  { %v151_v18 = vmax.f32 %v149_v14, %v150_v16 }
 0x115   :  { %v144_v19 = vmax.f32 %v142_v15, %v143_v17 }
 0x116   :  { %v152_v20 = vrot.slane %v151_v18, 1 }
 0x117   :  { %v145_v21 = vrot.slane %v144_v19, 1 }
 0x118   :  { %v153_v22 = vmax.f32 %v151_v18, %v152_v20 }
 0x119   :  { %v146_v23 = vmax.f32 %v144_v19, %v145_v21 }
 0x11a   :  { %v155_v24 = vsub.f32 %v239_v8, %v153_v22 }
 0x11b   :  { %v154_v25 = vsub.f32 %v131_v10, %v146_v23 }
 0x11c   :  { %v158_v26 = vmul.f32 1.442695, %v155_v24 }
 0x11d   :  { %v156_v27 = vmul.f32 1.442695, %v154_v25 }
 0x11e   :  { %257 = vpow2.f32 %v158_v26 }
 0x11f   :  { %259 = vpow2.f32 %v156_v27 }
 0x128   :  { %v258_v28 = vpop.eup %257 }
 0x129   :  { %v260_v29 = vpop.eup %259  ;;  %v167_v30 = vsel %vm46_vm0, %v258_v28, 0.0  ;;  %v175_v31 = vmul.f32 %v258_v28, %v41_v7 }
 0x12a   :  { %v168_v32 = vrot.slane %v167_v30, 4  ;;  %v160_v33 = vsel %vm46_vm0, %v260_v29, 0.0  ;;  %v174_v34 = vmul.f32 %v260_v29, %v40_v5 }
 0x12b   :  { %v161_v35 = vrot.slane %v160_v33, 4  ;;  %v183_v36 = vsel %vm46_vm0, %v175_v31, 0.0 }
 0x12c   :  { %v169_v37 = vadd.f32 %v168_v32, %v167_v30  ;;  %v176_v38 = vsel %vm46_vm0, %v174_v34, 0.0  ;;  %v184_v39 = vrot.slane %v183_v36, 4 }
 0x12d   :  { %v162_v40 = vadd.f32 %v161_v35, %v160_v33  ;;  %v177_v41 = vrot.slane %v176_v38, 4 }
 0x12e   :  { %v170_v42 = vrot.slane %v169_v37, 2  ;;  %v185_v44 = vadd.f32 %v184_v39, %v183_v36 }
 0x12f   :  { %v163_v43 = vrot.slane %v162_v40, 2  ;;  %v178_v46 = vadd.f32 %v177_v41, %v176_v38 }
 0x130   :  { %v171_v45 = vadd.f32 %v170_v42, %v169_v37  ;;  %v186_v50 = vrot.slane %v185_v44, 2 }
 0x131   :  { %v164_v47 = vadd.f32 %v163_v43, %v162_v40  ;;  %v179_v52 = vrot.slane %v178_v46, 2 }
 0x132   :  { %v172_v48 = vrot.slane %v171_v45, 1  ;;  %v187_v54 = vadd.f32 %v186_v50, %v185_v44 }
 0x133   :  { %v165_v49 = vrot.slane %v164_v47, 1  ;;  %v180_v55 = vadd.f32 %v179_v52, %v178_v46 }
 0x134   :  { %v173_v51 = vadd.f32 %v172_v48, %v171_v45  ;;  %v188_v56 = vrot.slane %v187_v54, 1 }
 0x135   :  { %v166_v53 = vadd.f32 %v165_v49, %v164_v47  ;;  %v181_v57 = vrot.slane %v180_v55, 1 }
 0x136   :  { %261 = vrcp.f32 %v173_v51  ;;  %v189_v58 = vadd.f32 %v188_v56, %v187_v54 }
 0x137   :  { %263 = vrcp.f32 %v166_v53  ;;  %v182_v60 = vadd.f32 %v181_v57, %v180_v55 }
 0x140   :  { %v262_v59 = vpop.eup %261 }
 0x141   :  { %v264_v61 = vpop.eup %263  ;;  %v193_v62 = vmul.f32 %v262_v59, %v189_v58 }
 0x142   :  { %v192_v63 = vmul.f32 %v264_v61, %v182_v60 }
 0x144   :  { %v197_v0 = vsel %vm196_vm2, %v193_v62, %v192_v63 }
 0x145   :  { %200 = vst.msk [vmem:[#allocation7] sm:$0x3] %vm199_vm3, %v197_v0 }
 0x146   :  { %320 = shalt.err (!%p317_p6)
}
 0x147   :  { %s321_s10 = scalar_lea.hbm %s405_s2, 32 }
 0x148   :  { %p322_p7 = scmp.ne.s32.totalorder %s405_s2, %s321_s10  ;;  %p325_p8 = scmp.lt.u32.totalorder %s321_s10, %s405_s2 }
 0x14a   :  { %p327_p9 = pnand %p325_p8, %p322_p7 }
 0x14c   :  { %330 = shalt.err (!%p327_p9)
}
 0x14d   :  { %210 = dma.vmem_to_hbm [thread:$0]  %s208_s6, 32, %s405_s2, [#allocation4]  }
 0x14e   :  { %335 = dma.done.wait [#allocation4], 32  }
 0x14f   :  { %336 = vsyncadd [#allocation4], 4294967264 }
 0x150   :  { %214 = vsyncpa [#allocation3], 1 }
 0x151   :  { %215 = vsyncpa [#allocation6], 1 }
 0x152   :  { %216 = vsyncpa [#allocation4], 1 }

</bundles_post_ra>
